<compile_context>
chip_gen: v5e
topology: v5e:2x2
jax: 0.10.0
libtpu: 0.0.40
codegen_flags: <defaults>
</compile_context>

<pallas_src>
import functools

import jax
import jax.numpy as jnp
from jax.experimental import pallas as pl
from jax.experimental.pallas import tpu as pltpu

ALPHA = 0.05                     # module default
LANES = 128
SUBLANES = 8
TARGET_TILE_BYTES = 2 * 1024 * 1024   # per input, per pipeline buffer


def _bce_blur_kernel(pred_ref, true_ref, partial_ref, *, tile_rows, rows_total,
                     alpha_inv, needs_mask):
    x = pred_ref[...].astype(jnp.float32)
    y = true_ref[...].astype(jnp.float32)

    # Numerically stable BCEWithLogitsLoss(reduction='none'):
    #   loss = max(x, 0) - x*y + log(1 + exp(-|x|))
    e = jnp.exp(-jnp.abs(x))                       # reused below for sigmoid
    loss = jnp.maximum(x, 0.0) - x * y + jnp.log1p(e)

    # sigmoid(x) from e = exp(-|x|):  x >= 0 -> 1/(1+e),  x < 0 -> e/(1+e)
    p = jnp.where(x >= 0.0, 1.0, e) * pl.reciprocal(1.0 + e, approx=True)
    alpha_factor = 1.0 - jnp.exp((p - y - 1.0) * alpha_inv)
    val = loss * alpha_factor

    def reduce_store(v):
        # Lane-preserving partial reduction: (tile_rows, 128) -> (8, 128) via
        # plain vreg adds; the tiny cross-lane reduce happens in the wrapper.
        partial_ref[...] = v.reshape(tile_rows // SUBLANES, SUBLANES, LANES).sum(axis=0)

    if needs_mask:
        # Only the last grid step can overhang the (rows_total, 128) array; all
        # full tiles skip the iota/compare/select entirely.
        t = pl.program_id(0)
        last = pl.num_programs(0) - 1

        @pl.when(t != last)
        def _():
            reduce_store(val)

        @pl.when(t == last)
        def _():
            # Out-of-bounds rows of the boundary block contain unspecified data;
            # they MUST be discarded with a select (jnp.where), never a multiply
            # (garbage inf/NaN * 0 = NaN).
            row = jax.lax.broadcasted_iota(jnp.int32, val.shape, 0) + t * tile_rows
            reduce_store(jnp.where(row < rows_total, val, 0.0))
    else:
        reduce_store(val)


def _loss_sum_ref(x, y, alpha):
    """Plain-jnp elementwise loss sum (used for the <128-element tail)."""
    x = x.astype(jnp.float32)
    y = y.astype(jnp.float32)
    e = jnp.exp(-jnp.abs(x))
    loss = jnp.maximum(x, 0.0) - x * y + jnp.log1p(e)
    p = jax.nn.sigmoid(x)
    af = 1.0 - jnp.exp((p - y - 1.0) / (alpha + 1e-4))
    return jnp.sum(loss * af)


def bce_blur_with_logits_loss(pred, true, alpha=ALPHA, true_stream_dtype=None):
    """Scalar mean loss, matching BCEBlurWithLogitsLoss(alpha).

    true_stream_dtype: optionally stream the (typically binary) target in a
    narrower dtype (e.g. jnp.bfloat16) to cut HBM traffic on v5e/v6e; values
    0/1 are exact so the result is unchanged.
    """
    assert pred.shape == true.shape
    n = int(pred.size)

    pred_f = jnp.ravel(pred)                      # keep native dtype in HBM
    true_f = jnp.ravel(true)
    if true_stream_dtype is not None:
        true_f = true_f.astype(true_stream_dtype)

    rows = n // LANES                             # 128-aligned prefix rows
    rem = n - rows * LANES

    # Tiny tail (<128 elements) handled in the wrapper — no pad copy needed.
    tail = (_loss_sum_ref(pred_f[rows * LANES:], true_f[rows * LANES:], alpha)
            if rem else jnp.float32(0.0))

    if rows == 0:
        return tail / jnp.float32(n)

    # Free (bitcast) reshape of the aligned prefix. For aligned inputs (e.g.
    # the demo shape) this slices nothing and copies nothing.
    pred2 = pred_f[:rows * LANES].reshape(rows, LANES)
    true2 = true_f[:rows * LANES].reshape(rows, LANES)

    # Row tile: multiple of 8, ~TARGET_TILE_BYTES per input per pipeline buffer.
    itemsize = max(pred2.dtype.itemsize, true2.dtype.itemsize)
    max_rows = max(SUBLANES,
                   (TARGET_TILE_BYTES // (LANES * itemsize)) // SUBLANES * SUBLANES)
    # v7x megacore balance: when there is enough work, cap tile_rows so the
    # parallel grid axis has at least 2 tiles for the 2 TensorCores.
    half_rows = (rows // 2) // SUBLANES * SUBLANES
    if half_rows >= SUBLANES:
        max_rows = min(max_rows, half_rows)
    tile_rows = max(SUBLANES, min(max_rows, pl.cdiv(rows, SUBLANES) * SUBLANES))

    num_tiles = pl.cdiv(rows, tile_rows)          # last tile may be ragged
    needs_mask = (rows % tile_rows) != 0          # trace-time constant

    kernel = functools.partial(
        _bce_blur_kernel,
        tile_rows=tile_rows,
        rows_total=rows,
        alpha_inv=1.0 / (alpha + 1e-4),
        needs_mask=needs_mask,
    )

    # VMEM budget scales with tile size: 2 double-buffered input tiles plus
    # ~8x block-sized f32 intermediates (x, y, e, loss, p, alpha_factor, ...)
    # plus fixed headroom. Stays well under v7x's 32 MiB scoped default.
    tile_in_bytes = tile_rows * LANES * (pred2.dtype.itemsize + true2.dtype.itemsize)
    f32_block_bytes = tile_rows * LANES * 4
    vmem_limit = int(2 * tile_in_bytes + 8 * f32_block_bytes + (2 << 20))

    partials = pl.pallas_call(
        kernel,
        out_shape=jax.ShapeDtypeStruct((num_tiles * SUBLANES, LANES), jnp.float32),
        grid=(num_tiles,),
        in_specs=[
            pl.BlockSpec((tile_rows, LANES), lambda t: (t, 0)),
            pl.BlockSpec((tile_rows, LANES), lambda t: (t, 0)),
        ],
        out_specs=pl.BlockSpec((SUBLANES, LANES), lambda t: (t, 0)),
        compiler_params=pltpu.CompilerParams(
            dimension_semantics=("parallel",),
            vmem_limit_bytes=vmem_limit,
        ),
    )(pred2, true2)

    # Tiny final reduce (num_tiles * 8 * 128 f32) + tail + mean normalization.
    return (jnp.sum(partials) + tail) / jnp.float32(n)


def _reference(pred, true, alpha=ALPHA):
    x = pred.astype(jnp.float32)
    y = true.astype(jnp.float32)
    loss = jnp.maximum(x, 0.0) - x * y + jnp.log1p(jnp.exp(-jnp.abs(x)))
    p = jax.nn.sigmoid(x)
    af = 1.0 - jnp.exp((p - y - 1.0) / (alpha + 1e-4))
    return jnp.mean(loss * af)


if __name__ == "__main__":
    key = jax.random.PRNGKey(0)
    k1, k2 = jax.random.split(key)
    shape = (2, 4, 16, 16)  # NCHW, as the PyTorch module would receive
    pred = jax.random.normal(k1, shape, dtype=jnp.float32)
    true = (jax.random.uniform(k2, shape) > 0.5).astype(jnp.float32)

    out = jax.block_until_ready(bce_blur_with_logits_loss(pred, true))
    ref = _reference(pred, true)

    # Tolerance accounts for the approximate EUP reciprocal used for sigmoid.
    assert jnp.allclose(out, ref, rtol=5e-4, atol=1e-6), (out, ref)
    print("KERNEL_OK")
</pallas_src>

<mosaic_0001>
module attributes {stable_mosaic.version = 11 : i64} {
  func.func @_bce_blur_kernel(%arg0: i32, %arg1: memref<8x128xf32, #tpu.memory_space<vmem>>, %arg2: memref<8x128xf32, #tpu.memory_space<vmem>>, %arg3: memref<8x128xf32, #tpu.memory_space<vmem>>) attributes {dimension_semantics = [#tpu.dimension_semantics<parallel>], iteration_bounds = array<i64: 2>, scalar_prefetch = 0 : i64, scratch_operands = 0 : i64, tpu.core_type = #tpu.core_type<tc>, window_params = [{transform_indices = @transform_0, window_bounds = array<i64: 8, 128>}, {transform_indices = @transform_1, window_bounds = array<i64: 8, 128>}, {transform_indices = @transform_2, window_bounds = array<i64: 8, 128>}]} {
    %c0 = arith.constant 0 : index
    %c0_0 = arith.constant 0 : index
    %0 = vector.load %arg1[%c0, %c0_0] : memref<8x128xf32, #tpu.memory_space<vmem>>, vector<8x128xf32>
    %c0_1 = arith.constant 0 : index
    %c0_2 = arith.constant 0 : index
    %1 = vector.load %arg2[%c0_1, %c0_2] : memref<8x128xf32, #tpu.memory_space<vmem>>, vector<8x128xf32>
    %2 = math.absf %0 : vector<8x128xf32>
    %cst = arith.constant 0.000000e+00 : f32
    %3 = vector.broadcast %cst : f32 to vector<8x128xf32>
    %4 = arith.subf %3, %2 : vector<8x128xf32>
    %5 = math.exp %4 : vector<8x128xf32>
    %cst_3 = arith.constant 0.000000e+00 : f32
    %6 = vector.broadcast %cst_3 : f32 to vector<8x128xf32>
    %7 = arith.maximumf %0, %6 : vector<8x128xf32>
    %8 = arith.mulf %0, %1 : vector<8x128xf32>
    %9 = arith.subf %7, %8 : vector<8x128xf32>
    %10 = math.log1p %5 : vector<8x128xf32>
    %11 = arith.addf %9, %10 : vector<8x128xf32>
    %cst_4 = arith.constant 0.000000e+00 : f32
    %12 = vector.broadcast %cst_4 : f32 to vector<8x128xf32>
    %13 = arith.cmpf oge, %0, %12 : vector<8x128xf32>
    %cst_5 = arith.constant 1.000000e+00 : f32
    %14 = vector.broadcast %cst_5 : f32 to vector<8x128xf32>
    %15 = arith.select %13, %14, %5 : vector<8x128xi1>, vector<8x128xf32>
    %cst_6 = arith.constant 1.000000e+00 : f32
    %16 = vector.broadcast %cst_6 : f32 to vector<8x128xf32>
    %17 = arith.addf %16, %5 : vector<8x128xf32>
    %18 = tpu.reciprocal %17 {approx = true} : vector<8x128xf32> -> vector<8x128xf32>
    %19 = arith.mulf %15, %18 : vector<8x128xf32>
    %20 = arith.subf %19, %1 : vector<8x128xf32>
    %cst_7 = arith.constant 1.000000e+00 : f32
    %21 = vector.broadcast %cst_7 : f32 to vector<8x128xf32>
    %22 = arith.subf %20, %21 : vector<8x128xf32>
    %cst_8 = arith.constant 19.9600792 : f32
    %23 = vector.broadcast %cst_8 : f32 to vector<8x128xf32>
    %24 = arith.mulf %22, %23 : vector<8x128xf32>
    %25 = math.exp %24 : vector<8x128xf32>
    %cst_9 = arith.constant 1.000000e+00 : f32
    %26 = vector.broadcast %cst_9 : f32 to vector<8x128xf32>
    %27 = arith.subf %26, %25 : vector<8x128xf32>
    %28 = arith.mulf %11, %27 : vector<8x128xf32>
    %29 = vector.shape_cast %28 : vector<8x128xf32> to vector<1x8x128xf32>
    %cst_10 = arith.constant dense<0.000000e+00> : vector<8x128xf32>
    %30 = vector.multi_reduction <add>, %29, %cst_10 [0] : vector<1x8x128xf32> to vector<8x128xf32>
    %c0_11 = arith.constant 0 : index
    %c0_12 = arith.constant 0 : index
    %31 = vector.load %arg3[%c0_11, %c0_12] : memref<8x128xf32, #tpu.memory_space<vmem>>, vector<8x128xf32>
    tpu.vector_store %arg3[%c0_11, %c0_12], %30 {strides = array<i32>} : memref<8x128xf32, #tpu.memory_space<vmem>>, vector<8x128xf32>,
    return
  }
  func.func @transform_0(%arg0: i32) -> (i32, i32) {
    %c0_i32 = arith.constant 0 : i32
    %c0_i32_0 = arith.constant 0 : i32
    return %arg0, %c0_i32 : i32, i32
  }
  func.func @transform_1(%arg0: i32) -> (i32, i32) {
    %c0_i32 = arith.constant 0 : i32
    %c0_i32_0 = arith.constant 0 : i32
    return %arg0, %c0_i32 : i32, i32
  }
  func.func @transform_2(%arg0: i32) -> (i32, i32) {
    %c0_i32 = arith.constant 0 : i32
    %c0_i32_0 = arith.constant 0 : i32
    return %arg0, %c0_i32 : i32, i32
  }
}

</mosaic_0001>

<bundles_post_ra>
// kernel: tpu_custom_call.1
= control target key start
LH: loop header
LB: loop body
LE: loop exit
PB: predicated region body
PF: predicated region fallthrough
CT: control target
= control target key end

     0   :  { %7 = vsyncpa [#allocation3], 0  ;;  %s729_s0 = inlined_call_operand.hbm [shape: f32[16,128], index: 0, kind: input, shape index: {}]   ;;  %s730_s1 = inlined_call_operand.hbm [shape: f32[16,128], index: 1, kind: input, shape index: {}]   ;;  %s731_s2 = inlined_call_operand.hbm [shape: f32[16,128], index: 2, kind: output, shape index: {}]  }
   0x1   :  { %9 = vsyncpa [#allocation3 + $0x1], 0 }
   0x2   :  { %10 = vsyncpa [#allocation6], 0 }
   0x3   :  { %12 = vsyncpa [#allocation6 + $0x1], 0 }
   0x4   :  { %13 = vsyncpa [#allocation4], 0 }
   0x5   :  { %15 = vsyncpa [#allocation4 + $0x1], 0  ;;  %s564_s9 = smov 0   ;;  %s566_s10 = smov 0  }
   0x6   :  { %s568_s11 = smov 0   ;;  %s570_s12 = smov 0  }
   0x7 LB: > { %s585_s13 = sadd.s32 4294967295, %s547_s12   ;;  %s342_s14 = sadd.s32 4294967294, %s547_s12   ;;  %s547_s12 = sphi %s570_s12, %s742_s12   ;;  %s543_s11 = sphi %s568_s11, %s741_s11   ;;  %s539_s10 = sphi %s566_s10, %s740_s10   ;;  %s535_s9 = sphi %s564_s9, %s739_s9  }
   0x8   : > { %s589_s15 = sadd.s32 1, %s547_s12   ;;  %s28_s16 = sadd.s32 1, %s543_s11 }
   0x9   : > { %s25_s17 = ssub.s32 %s547_s12, %s589_s15  ;;  %p35_p0 = scmp.ne.s32.totalorder %s543_s11, %s539_s10 }
   0xa   : > { %p26_p1 = scmp.eq.s32.totalorder %s25_s17, 0  ;;  %p36_p2 = scmp.eq.s32.totalorder %s547_s12, 0 }
   0xb   : > { %p41_p3 = scmp.ne.s32.totalorder %s539_s10, %s535_s9  ;;  %p42_p4 = scmp.eq.s32.totalorder %s585_s13, 0 }
   0xc   : > { %s601_s18 = scalar_select %p26_p1, %s543_s11, %s28_s16  }
   0xd   : > { %p603_p5 = por %p36_p2, %p35_p0  ;;  %p607_p6 = por %p42_p4, %p41_p3 }
   0xe   : > { %p91_p7 = scmp.eq.s32.totalorder %s585_s13, 1  ;;  %p97_p8 = scmp.eq.s32.totalorder %s342_s14, 1 }
   0xf   : > { %p375_p10 = scmp.lt.s32.totalorder %s547_s12, 2  ;;  %s623_s23 = sand.u32 1, %s543_s11  }
  0x10   : > { %p614_p11 = por %p91_p7, %p35_p0  ;;  %p618_p12 = por %p97_p8, %p41_p3 }
  0x11   : > { %s346_s24 = sshll.u32 %s547_s12, 3  ;;  %s345_s25 = sshll.u32 %s623_s23, 3 }
  0x12   : > { %s125_s28 = scalar_lea.hbm %s729_s0, %s346_s24  ;;  %s121_s30 = scalar_lea.vmem [#allocation2], %s345_s25 }
  0x13   : > { %s127_s29 = sshll.u32 %s125_s28, 4  ;;  %s129_s3 = sshll.u32 %s121_s30, 4  ;;  %s128_s29 = int_to_ptr.hbm [resolvable:$true] %s127_s29  ;;  %s130_s3 = int_to_ptr.vmem [resolvable:$true] %s129_s3 }
  0x14   : > { %p632_p13 = pnand %p375_p10, %p603_p5  ;;  %p349_p0 = scmp.ge.s32.totalorder %s547_s12, 1 }
  0x15   : > { %p153_p1 = scmp.lt.s32.totalorder %s547_s12, 3  ;;  %s118_s5 = scalar_lea.sflag [#allocation3], %s623_s23 }
  0x16   : > { %s417_s6 = sshra.s32 %s128_s29, 4  ;;  %p421_p3 = pneg %p632_p13  ;;  %s418_s6 = int_to_ptr.hbm [resolvable:$true] %s417_s6 }
  0x17   : > { %s419_s7 = scalar_lea.hbm %s418_s6, 8  ;;  %s424_s16 = scalar_lea.hbm %s729_s0, 16 }
  0x18   : > { %p420_p2 = scmp.ne.s32.totalorder %s418_s6, %s419_s7  ;;  %p425_p5 = scmp.lt.s32.totalorder %s418_s6, %s729_s0 }
  0x19   : > { %p426_p8 = scmp.lt.s32.totalorder %s424_s16, %s419_s7 }
  0x1a   : > { %p422_p4 = pnand %p421_p3, %p420_p2 }
  0x1b   : > { %p427_p10 = por %p426_p8, %p425_p5 }
  0x1c   : > { %p423_p7 = pneg %p422_p4 }
  0x1e   : > { %p428_p9 = pnand %p427_p10, %p423_p7 }
  0x20   : > { %431 = shalt.err (!%p428_p9)
}
  0x21   : > { %367 = dma.hbm_to_vmem [thread:$0]  (!%p632_p13), %s128_s29, 128, %s130_s3, %s118_s5  }
  0x22   : > { %p656_p2 = pnand %p349_p0, %p153_p1  ;;  %s144_s30 = scalar_lea.hbm %s730_s1, %s346_s24 }
  0x23   : > { %s146_s6 = sshll.u32 %s144_s30, 4  ;;  %s140_s7 = scalar_lea.vmem [#allocation5], %s345_s25  ;;  %s147_s6 = int_to_ptr.hbm [resolvable:$true] %s146_s6 }
  0x24   : > { %s148_s8 = sshll.u32 %s140_s7, 4  ;;  %s137_s14 = scalar_lea.sflag [#allocation6], %s623_s23  ;;  %s149_s8 = int_to_ptr.vmem [resolvable:$true] %s148_s8 }
  0x25   : > { %s447_s16 = sshra.s32 %s147_s6, 4  ;;  %s454_s5 = scalar_lea.hbm %s730_s1, 16  ;;  %s448_s16 = int_to_ptr.hbm [resolvable:$true] %s447_s16 }
  0x26   : > { %s449_s17 = scalar_lea.hbm %s448_s16, 8  ;;  %p455_p4 = scmp.lt.s32.totalorder %s448_s16, %s730_s1 }
  0x27   : > { %p450_p9 = scmp.ne.s32.totalorder %s448_s16, %s449_s17  ;;  %p456_p7 = scmp.lt.s32.totalorder %s454_s5, %s449_s17 }
  0x29   : > { %p452_p0 = pnand %p450_p9, %p421_p3  ;;  %p457_p5 = por %p456_p7, %p455_p4 }
  0x2b   : > { %p453_p1 = pneg %p452_p0 }
  0x2d   : > { %p458_p8 = pnand %p457_p5, %p453_p1 }
  0x2f   : > { %461 = shalt.err (!%p458_p8)
}
  0x30   : > { %370 = dma.hbm_to_vmem [thread:$0]  (!%p632_p13), %s147_s6, 128, %s149_s8, %s137_s14  }
  0x31   : > { %157 = sbr.rel (%p656_p2) target bundleno = 104 (0x68), region = 28  ;;  %s678_s23 = sand.u32 (!%p656_p2), 1, %s539_s10  }
  0x32   : > { %s681_s25 = sshll.u32 (!%p656_p2), %s678_s23, 3  ;;  %s160_s27 = scalar_lea.sflag (!%p656_p2), [#allocation3], %s678_s23 }
  0x33   : > { %s163_s28 = scalar_lea.vmem (!%p656_p2), [#allocation2], %s681_s25 }
  0x36   : > { %522 = dma.done.wait (%p607_p6), %s160_s27, 128  }
  0x37   : > { %524 = vsyncadd (%p607_p6), %s160_s27, 4294967168  ;;  %s170_s4 = scalar_lea.sflag [#allocation6], %s678_s23  ;;  %s173_s26 = scalar_lea.vmem [#allocation5], %s681_s25 }
  0x38   : > { %526 = dma.done.wait (%p607_p6), %s170_s4, 128  }
  0x39   : > { %528 = vsyncadd (%p607_p6), %s170_s4, 4294967168  ;;  %v200_v0 = vld [vmem:[%s163_s28] sm:$0xff]  ;;  %v201_v8 = vld [vmem:[%s173_s26] sm:$0xff]  ;;  %s355_s20 = sshll.u32 %s585_s13, 3  ;;  %s199_s8 = scalar_lea.vmem [#allocation7], %s681_s25 }
  0x3a   : > { %v202_v1 = vand.u32 2147483647, %v200_v0  ;;  %vm219_vm0 = vcmp.ge.f32.partialorder %v200_v0, 0.0  ;;  %v206_v17 = vmax.f32 %v200_v0, 0.0  ;;  %v207_v18 = vmul.f32 %v201_v8, %v200_v0  ;;  %s244_s7 = scalar_lea.hbm %s731_s2, %s355_s20  ;;  %s246_s14 = sshll.u32 %s199_s8, 4  ;;  %s247_s14 = int_to_ptr.vmem [resolvable:$true] %s246_s14 }
  0x3b   : > { %s248_s16 = sshll.u32 %s244_s7, 4  ;;  %s234_s17 = scalar_lea.sflag [#allocation4], %s678_s23  ;;  %s249_s16 = int_to_ptr.hbm [resolvable:$true] %s248_s16 }
  0x3c   : > { %v203_v2 = vsub.f32 0.0, %v202_v1  ;;  %v208_v22 = vsub.f32 %v206_v17, %v207_v18  ;;  %s491_s29 = sshra.s32 %s249_s16, 4  ;;  %s497_s19 = scalar_lea.hbm %s731_s2, 16  ;;  %s492_s29 = int_to_ptr.hbm [resolvable:$true] %s491_s29 }
  0x3d   : > { %s493_s13 = scalar_lea.hbm %s492_s29, 8  ;;  %p498_p10 = scmp.lt.s32.totalorder %s492_s29, %s731_s2 }
  0x3e   : > { %v204_v3 = vmul.f32 1.442695, %v203_v2  ;;  %p494_p6 = scmp.ne.s32.totalorder %s492_s29, %s493_s13  ;;  %p499_p2 = scmp.lt.s32.totalorder %s497_s19, %s493_s13 }
  0x40   : > { %409 = vpow2.f32 %v204_v3  ;;  %p495_p13 = pnand %p494_p6, %p614_p11  ;;  %p500_p9 = por %p499_p2, %p498_p10 }
  0x42   : > { %p496_p3 = pneg %p495_p13 }
  0x44   : > { %p501_p0 = pnand %p500_p9, %p496_p3 }
  0x46   : > { %v410_v4 = vpop.eup %409 }
  0x47   : > { %v209_v5 = vadd.f32 1.0, %v410_v4  ;;  %v220_v6 = vsel %vm219_vm0, 1.0, %v410_v4  ;;  %v212_v9 = vmul.f32 -0.5, %v410_v4  ;;  %v215_v15 = vand.u32 2147483647, %v410_v4 }
  0x49   : > { %411 = vrcp.f32 %v209_v5  ;;  %v213_v12 = vadd.f32 1.0, %v212_v9  ;;  %vm216_vm1 = vcmp.lt.f32.partialorder %v215_v15, 0.0004427343 }
  0x4a   : > { %413 = vlog2.f32 %v209_v5 }
  0x4b   : > { %v214_v20 = vmul.f32 %v410_v4, %v213_v12 }
  0x4f   : > { %v412_v7 = vpop.eup %411 }
  0x50   : > { %v223_v10 = vmul.f32 %v412_v7, %v220_v6  ;;  %v414_v14 = vpop.eup %413 }
  0x51   : > { %v211_v19 = vmul.f32 0.6931472, %v414_v14 }
  0x52   : > { %v224_v11 = vsub.f32 %v223_v10, %v201_v8 }
  0x53   : > { %v217_v23 = vsel %vm216_vm1, %v214_v20, %v211_v19 }
  0x54   : > { %v353_v13 = vadd.f32 -1.0, %v224_v11  ;;  %v218_v24 = vadd.f32 %v217_v23, %v208_v22 }
  0x56   : > { %v226_v16 = vmul.f32 19.96008, %v353_v13 }
  0x58   : > { %v227_v21 = vmul.f32 1.442695, %v226_v16 }
  0x5a   : > { %415 = vpow2.f32 %v227_v21 }
  0x60   : > { %v416_v25 = vpop.eup %415 }
  0x61   : > { %v229_v26 = vsub.f32 1.0, %v416_v25 }
  0x63   : > { %v230_v27 = vmul.f32 %v229_v26, %v218_v24 }
  0x65   : > { %232 = vst [vmem:[%s199_s8] sm:$0xff] %v230_v27 }
  0x66   : > { %504 = shalt.err (!%p501_p0)
}
  0x67   : > { %362 = dma.vmem_to_hbm [thread:$0]  (%p614_p11), %s247_s14, 128, %s249_s16, %s234_s17  }
  0x68 PF: > { %s260_s23 = sand.u32 1, %s535_s9   ;;  %p738_p1 = scmp.ge.s32.totalorder %s547_s12, 2 }
  0x69   : > { %s261_s27 = scalar_lea.sflag [#allocation4], %s260_s23 }
  0x6a   : > { %p372_p4 = pnand %p738_p1, %p618_p12 }
  0x6c   : > { %p373_p7 = pneg %p372_p4 }
  0x6e   : > { %530 = dma.done.wait (%p373_p7), %s261_s27, 128  }
  0x6f   : > { %532 = vsyncadd (%p373_p7), %s261_s27, 4294967168  ;;  %p18_p5 = scmp.ge.s32.totalorder %s589_s15, 4   ;;  %s739_s9 = smov %s539_s10 }
  0x70   : > { %s740_s10 = smov %s543_s11  ;;  %s741_s11 = smov %s601_s18 }
  0x71   : > { %s742_s12 = smov %s589_s15  ;;  %20 = sbr.rel (!%p18_p5) target bundleno = 7 (0x7), region = 86 }
  0x76   :  { %267 = vsyncpa [#allocation3], 1 }
  0x77   :  { %269 = vsyncpa [#allocation3 + $0x1], 1 }
  0x78   :  { %270 = vsyncpa [#allocation6], 1 }
  0x79   :  { %272 = vsyncpa [#allocation6 + $0x1], 1 }
  0x7a   :  { %273 = vsyncpa [#allocation4], 1 }
  0x7b   :  { %275 = vsyncpa [#allocation4 + $0x1], 1 }

</bundles_post_ra>
